<compile_context>
chip_gen: v7x
topology: tpu7x:2x2x1
jax: 0.10.0
libtpu: 0.0.40
codegen_flags: <defaults>
</compile_context>

<pallas_src>
import jax
import jax.numpy as jnp
from jax import lax
from jax.experimental import pallas as pl
from jax.experimental.pallas import tpu as pltpu


def _round_up(n, m):
    return ((n + m - 1) // m) * m


def mlp_kernel(x_ref, w1_ref, b1_ref, w2_ref, b2_ref, w3_ref, b3_ref, o_ref):
    # Layer 1: contract the feature axis of the (TILE_B, in) x tile directly
    # against w1 [h1, in]; the result keeps the batch on the lane axis.
    h1 = lax.dot_general(
        w1_ref[...], x_ref[...],
        dimension_numbers=(((1,), (1,)), ((), ())),
        preferred_element_type=jnp.float32,
    ) + b1_ref[...]                                            # (h1, TILE_B) f32
    h1 = jnp.maximum(h1, 0.0)
    # TODO(synk): dropout identity (eval mode).
    h2 = jnp.dot(w2_ref[...], h1.astype(w2_ref.dtype),
                 preferred_element_type=jnp.float32) + b2_ref[...]   # (h2, TILE_B)
    h2 = jnp.maximum(h2, 0.0)
    pred = jnp.dot(w3_ref[...], h2.astype(w3_ref.dtype),
                   preferred_element_type=jnp.float32) + b3_ref[...]  # (1, TILE_B)
    o_ref[...] = pred.astype(o_ref.dtype)


def standard_nn_forward(x, params, *, tile_b=None, compute_dtype=None):
    """Fused MLP forward.  x: [batch, in_feats] -> [batch, 1] f32.

    compute_dtype: optional matmul-input dtype (e.g. jnp.bfloat16).  Weights and
    x are cast at the boundary; accumulation/bias/ReLU stay f32.  For the bf16
    HBM win to be real the caller should ideally produce x in compute_dtype
    already (the boundary cast is then a no-op).
    """
    batch, in_feats = x.shape
    h1_dim = params["w1"].shape[0]
    h2_dim = params["w2"].shape[0]

    w_dtype = compute_dtype if compute_dtype is not None else x.dtype
    if x.dtype != w_dtype:
        x = x.astype(w_dtype)
    w1 = params["w1"].astype(w_dtype)
    w2 = params["w2"].astype(w_dtype)
    w3 = params["w3"].astype(w_dtype)
    b1 = params["b1"].astype(jnp.float32)
    b2 = params["b2"].astype(jnp.float32)
    b3 = params["b3"].astype(jnp.float32)

    # Tile selection: big lane-aligned tiles amortize per-step overhead; for
    # large batches keep >= 2 grid steps so v7x megacore can split the batch.
    if tile_b is None:
        if batch <= 256:
            tile_b = batch
        else:
            tile_b = min(4096, _round_up(pl.cdiv(batch, 2), 128))
    else:
        tile_b = min(tile_b, batch)
    if tile_b < batch:
        tile_b = _round_up(tile_b, 128)     # lane-aligned blocks for a cdiv grid
    num_tiles = pl.cdiv(batch, tile_b)      # ragged last tile handled by Pallas

    grid_spec = pltpu.PrefetchScalarGridSpec(
        num_scalar_prefetch=0,
        grid=(num_tiles,),
        in_specs=[
            # x: batch-tiled (dominant HBM stream; default double-buffering —
            # bump to pipeline_mode=pl.Buffered(3) only if a trace shows
            # exposed DMA at step starts).
            pl.BlockSpec((tile_b, in_feats), lambda i: (i, 0)),
            pl.BlockSpec((h1_dim, in_feats), lambda i: (0, 0)),   # w1 [out,in] resident
            pl.BlockSpec((h1_dim, 1), lambda i: (0, 0)),          # b1 column
            pl.BlockSpec((h2_dim, h1_dim), lambda i: (0, 0)),     # w2 [out,in] resident
            pl.BlockSpec((h2_dim, 1), lambda i: (0, 0)),          # b2 column
            pl.BlockSpec((1, h2_dim), lambda i: (0, 0)),          # w3 [out,in]
            pl.BlockSpec((1, 1), lambda i: (0, 0)),               # b3
        ],
        out_specs=pl.BlockSpec((1, tile_b), lambda i: (0, i)),    # lane-major output
    )

    out = pl.pallas_call(
        mlp_kernel,
        out_shape=jax.ShapeDtypeStruct((1, batch), jnp.float32),
        grid_spec=grid_spec,
        compiler_params=pltpu.CompilerParams(
            dimension_semantics=("parallel",),
        ),
    )(x, w1, b1, w2, b2, w3, b3)

    return out.reshape(batch, 1)


def init_params(key, in_feats):
    """nn.Linear-style init (uniform +/- 1/sqrt(fan_in)).

    All weights kept in PyTorch [out_features, in_features] layout; biases as
    (out, 1) columns so they broadcast along the lane (batch) axis in-kernel.
    """
    h1 = in_feats // 2
    h2 = in_feats // 4
    keys = jax.random.split(key, 6)

    def lin(kw, kb, fan_in, out_f):
        bound = 1.0 / float(fan_in) ** 0.5
        w = jax.random.uniform(kw, (out_f, fan_in), jnp.float32, -bound, bound)
        b = jax.random.uniform(kb, (out_f, 1), jnp.float32, -bound, bound)
        return w, b

    w1, b1 = lin(keys[0], keys[1], in_feats, h1)
    w2, b2 = lin(keys[2], keys[3], h1, h2)
    w3, b3 = lin(keys[4], keys[5], h2, 1)
    return {"w1": w1, "b1": b1, "w2": w2, "b2": b2, "w3": w3, "b3": b3}


def _reference(x, params, compute_dtype=None):
    """Pure-JAX reference (eval-mode dropout == identity)."""
    dt = compute_dtype if compute_dtype is not None else x.dtype
    w1 = params["w1"].astype(dt)
    w2 = params["w2"].astype(dt)
    w3 = params["w3"].astype(dt)
    h1 = jnp.maximum(
        jnp.dot(x.astype(dt), w1.T, preferred_element_type=jnp.float32)
        + params["b1"].T, 0.0)
    h2 = jnp.maximum(
        jnp.dot(h1.astype(dt), w2.T, preferred_element_type=jnp.float32)
        + params["b2"].T, 0.0)
    return (jnp.dot(h2.astype(dt), w3.T, preferred_element_type=jnp.float32)
            + params["b3"].T)


if __name__ == "__main__":
    key = jax.random.PRNGKey(0)
    k_x, k_p, k_x2 = jax.random.split(key, 3)

    in_feats = 32          # number of edge features
    params = init_params(k_p, in_feats)

    # Small single-tile f32 run (shapes implied by the module) — exact path.
    batch = 8
    x = jax.random.normal(k_x, (batch, in_feats), dtype=jnp.float32)
    pred = jax.block_until_ready(standard_nn_forward(x, params))
    assert pred.shape == (batch, 1)
    assert jnp.allclose(pred, _reference(x, params), atol=1e-4, rtol=1e-4)

    # Multi-tile run with a ragged last tile and bf16 matmul inputs: exercises
    # the batch grid, resident weights, masked ragged writeback, and the
    # lane-dense batch-on-lanes compute path.
    batch2 = 3000
    x2 = jax.random.normal(k_x2, (batch2, in_feats), dtype=jnp.float32)
    pred2 = jax.block_until_ready(
        standard_nn_forward(x2, params, tile_b=1024, compute_dtype=jnp.bfloat16))
    assert pred2.shape == (batch2, 1)
    # Structural check vs a bf16-matched reference (tight-ish) ...
    assert jnp.allclose(pred2, _reference(x2, params, jnp.bfloat16),
                        atol=5e-3, rtol=5e-3)
    # ... and a semantic check vs the pure-f32 reference (bf16-loose).
    assert jnp.allclose(pred2, _reference(x2, params), atol=5e-2, rtol=5e-2)

    print("KERNEL_OK")
</pallas_src>

<mosaic_0001>
module attributes {stable_mosaic.version = 11 : i64} {
  func.func @mlp_kernel(%arg0: i32, %arg1: memref<8x32xf32, #tpu.memory_space<vmem>>, %arg2: memref<16x32xf32, #tpu.memory_space<vmem>>, %arg3: memref<16x1xf32, #tpu.memory_space<vmem>>, %arg4: memref<8x16xf32, #tpu.memory_space<vmem>>, %arg5: memref<8x1xf32, #tpu.memory_space<vmem>>, %arg6: memref<1x8xf32, #tpu.memory_space<vmem>>, %arg7: memref<1x1xf32, #tpu.memory_space<vmem>>, %arg8: memref<1x8xf32, #tpu.memory_space<vmem>>) attributes {dimension_semantics = [#tpu.dimension_semantics<parallel>], iteration_bounds = array<i64: 1>, scalar_prefetch = 0 : i64, scratch_operands = 0 : i64, tpu.core_type = #tpu.core_type<tc>, window_params = [{transform_indices = @transform_0, window_bounds = array<i64: 8, 32>}, {pipeline_mode = #tpu.pipeline_mode<synchronous>, transform_indices = @transform_1, window_bounds = array<i64: 16, 32>}, {pipeline_mode = #tpu.pipeline_mode<synchronous>, transform_indices = @transform_2, window_bounds = array<i64: 16, 1>}, {pipeline_mode = #tpu.pipeline_mode<synchronous>, transform_indices = @transform_3, window_bounds = array<i64: 8, 16>}, {pipeline_mode = #tpu.pipeline_mode<synchronous>, transform_indices = @transform_4, window_bounds = array<i64: 8, 1>}, {pipeline_mode = #tpu.pipeline_mode<synchronous>, transform_indices = @transform_5, window_bounds = array<i64: 1, 8>}, {pipeline_mode = #tpu.pipeline_mode<synchronous>, transform_indices = @transform_6, window_bounds = array<i64: 1, 1>}, {transform_indices = @transform_7, window_bounds = array<i64: 1, 8>}]} {
    %c0 = arith.constant 0 : index
    %c0_0 = arith.constant 0 : index
    %0 = vector.load %arg2[%c0, %c0_0] : memref<16x32xf32, #tpu.memory_space<vmem>>, vector<16x32xf32>
    %c0_1 = arith.constant 0 : index
    %c0_2 = arith.constant 0 : index
    %1 = vector.load %arg1[%c0_1, %c0_2] : memref<8x32xf32, #tpu.memory_space<vmem>>, vector<8x32xf32>
    %cst = arith.constant dense<0.000000e+00> : vector<16x8xf32>
    %2 = tpu.matmul %0, %1, %cst {dimension_numbers = #tpu.dot_dimension_numbers<[1], [1], [0], [0], [0, 0, 1, 0], [], []>} : vector<16x32xf32>, vector<8x32xf32>, vector<16x8xf32> -> vector<16x8xf32>
    %c0_3 = arith.constant 0 : index
    %c0_4 = arith.constant 0 : index
    %3 = vector.load %arg3[%c0_3, %c0_4] : memref<16x1xf32, #tpu.memory_space<vmem>>, vector<16x1xf32>
    %4 = vector.broadcast %3 : vector<16x1xf32> to vector<16x8xf32>
    %5 = arith.addf %2, %4 : vector<16x8xf32>
    %cst_5 = arith.constant 0.000000e+00 : f32
    %6 = vector.broadcast %cst_5 : f32 to vector<16x8xf32>
    %7 = arith.maximumf %5, %6 : vector<16x8xf32>
    %c0_6 = arith.constant 0 : index
    %c0_7 = arith.constant 0 : index
    %8 = vector.load %arg4[%c0_6, %c0_7] : memref<8x16xf32, #tpu.memory_space<vmem>>, vector<8x16xf32>
    %cst_8 = arith.constant dense<0.000000e+00> : vector<8x8xf32>
    %9 = tpu.matmul %8, %7, %cst_8 {dimension_numbers = #tpu.dot_dimension_numbers<[1], [0], [0], [1], [0, 0, 1, 1], [], []>} : vector<8x16xf32>, vector<16x8xf32>, vector<8x8xf32> -> vector<8x8xf32>
    %c0_9 = arith.constant 0 : index
    %c0_10 = arith.constant 0 : index
    %10 = vector.load %arg5[%c0_9, %c0_10] : memref<8x1xf32, #tpu.memory_space<vmem>>, vector<8x1xf32>
    %11 = vector.broadcast %10 : vector<8x1xf32> to vector<8x8xf32>
    %12 = arith.addf %9, %11 : vector<8x8xf32>
    %cst_11 = arith.constant 0.000000e+00 : f32
    %13 = vector.broadcast %cst_11 : f32 to vector<8x8xf32>
    %14 = arith.maximumf %12, %13 : vector<8x8xf32>
    %c0_12 = arith.constant 0 : index
    %c0_13 = arith.constant 0 : index
    %15 = vector.load %arg6[%c0_12, %c0_13] : memref<1x8xf32, #tpu.memory_space<vmem>>, vector<1x8xf32>
    %cst_14 = arith.constant dense<0.000000e+00> : vector<1x8xf32>
    %16 = tpu.matmul %15, %14, %cst_14 {dimension_numbers = #tpu.dot_dimension_numbers<[1], [0], [0], [1], [0, 0, 1, 1], [], []>} : vector<1x8xf32>, vector<8x8xf32>, vector<1x8xf32> -> vector<1x8xf32>
    %c0_15 = arith.constant 0 : index
    %c0_16 = arith.constant 0 : index
    %17 = vector.load %arg7[%c0_15, %c0_16] : memref<1x1xf32, #tpu.memory_space<vmem>>, vector<1x1xf32>
    %18 = vector.broadcast %17 : vector<1x1xf32> to vector<1x8xf32>
    %19 = arith.addf %16, %18 : vector<1x8xf32>
    %c0_17 = arith.constant 0 : index
    %c0_18 = arith.constant 0 : index
    %20 = vector.load %arg8[%c0_17, %c0_18] : memref<1x8xf32, #tpu.memory_space<vmem>>, vector<1x8xf32>
    tpu.vector_store %arg8[%c0_17, %c0_18], %19 {strides = array<i32>} : memref<1x8xf32, #tpu.memory_space<vmem>>, vector<1x8xf32>,
    return
  }
  func.func @transform_0(%arg0: i32) -> (i32, i32) {
    %c0_i32 = arith.constant 0 : i32
    %c0_i32_0 = arith.constant 0 : i32
    return %arg0, %c0_i32 : i32, i32
  }
  func.func @transform_1(%arg0: i32) -> (i32, i32) {
    %c0_i32 = arith.constant 0 : i32
    %c0_i32_0 = arith.constant 0 : i32
    %c0_i32_1 = arith.constant 0 : i32
    return %c0_i32, %c0_i32_0 : i32, i32
  }
  func.func @transform_2(%arg0: i32) -> (i32, i32) {
    %c0_i32 = arith.constant 0 : i32
    %c0_i32_0 = arith.constant 0 : i32
    %c0_i32_1 = arith.constant 0 : i32
    return %c0_i32, %c0_i32_0 : i32, i32
  }
  func.func @transform_3(%arg0: i32) -> (i32, i32) {
    %c0_i32 = arith.constant 0 : i32
    %c0_i32_0 = arith.constant 0 : i32
    %c0_i32_1 = arith.constant 0 : i32
    return %c0_i32, %c0_i32_0 : i32, i32
  }
  func.func @transform_4(%arg0: i32) -> (i32, i32) {
    %c0_i32 = arith.constant 0 : i32
    %c0_i32_0 = arith.constant 0 : i32
    %c0_i32_1 = arith.constant 0 : i32
    return %c0_i32, %c0_i32_0 : i32, i32
  }
  func.func @transform_5(%arg0: i32) -> (i32, i32) {
    %c0_i32 = arith.constant 0 : i32
    %c0_i32_0 = arith.constant 0 : i32
    %c0_i32_1 = arith.constant 0 : i32
    return %c0_i32, %c0_i32_0 : i32, i32
  }
  func.func @transform_6(%arg0: i32) -> (i32, i32) {
    %c0_i32 = arith.constant 0 : i32
    %c0_i32_0 = arith.constant 0 : i32
    %c0_i32_1 = arith.constant 0 : i32
    return %c0_i32, %c0_i32_0 : i32, i32
  }
  func.func @transform_7(%arg0: i32) -> (i32, i32) {
    %c0_i32 = arith.constant 0 : i32
    %c0_i32_0 = arith.constant 0 : i32
    return %c0_i32, %arg0 : i32, i32
  }
}

</mosaic_0001>

<bundles_post_ra>
// kernel: tpu_custom_call.1
= control target key start
LH: loop header
LB: loop body
LE: loop exit
PB: predicated region body
PF: predicated region fallthrough
CT: control target
= control target key end

     0   :  { %s462_s0 = inlined_call_operand.vmem [shape: f32[8,32], index: 0, kind: input, shape index: {}]   ;;  %s463_s1 = inlined_call_operand.vmem [shape: f32[16,32], index: 1, kind: input, shape index: {}]   ;;  %s464_s2 = inlined_call_operand.vmem [shape: f32[16,1], index: 2, kind: input, shape index: {}]   ;;  %s465_s3 = inlined_call_operand.vmem [shape: f32[8,16], index: 3, kind: input, shape index: {}]   ;;  %s466_s4 = inlined_call_operand.vmem [shape: f32[8,1], index: 4, kind: input, shape index: {}]   ;;  %s467_s5 = inlined_call_operand.vmem [shape: f32[1,8], index: 5, kind: input, shape index: {}]   ;;  %s468_s6 = inlined_call_operand.<no memory space> [shape: f32[1,1], index: 6, kind: input, shape index: {}]   ;;  %s469_s7 = inlined_call_operand.hbm [shape: f32[1,8], index: 7, kind: output, shape index: {}]  }
   0x1   :  { %v12_v0 = vstv %s468_s6 }
   0x2   :  { %13 = vst [vmem:[#allocation2] sm:$0x1] %v12_v0 }
   0x3   :  { %v31_v1 = vld [vmem:[%s462_s0] sm:$0xff]  ;;  %vm44_vm0 = vcmask 261120  }
   0x4   :  { %v29_v2 = vld [vmem:[%s463_s1] sm:$0xff]  ;;  %327 = vmatprep.subr.msk.mxu0 %vm44_vm0, %v31_v1 }
   0x5   :  { %329 = vmatprep.mubr.msk.f32.mxu0 %vm44_vm0, %v29_v2  ;;  %v32_v3 = vld [vmem:[%s464_s2] sm:$0xff] }
   0x6   :  { %14 = vsyncpa [#allocation4], 0  ;;  %328 = vmatpush3.xpose.msk.msra.mxu0 %vm44_vm0, %v31_v1  ;;  %v30_v4 = vld [vmem:[%s463_s1 + $0x8] sm:$0xff]  ;;  %v378_v5 = vmov 0   ;;  %v379_v7 = vmov 0.0|0.0   ;;  %vm380_vm1 = vmmov 0   ;;  %v220_v27 = vlaneseq }
   0x7   :  { %352 = vset.pattern.permute.xlu0 %v378_v5  ;;  %353 = vset.pattern.permute.xlu1 %v378_v5  ;;  %v33_v6 = vld [vmem:[%s464_s2 + $0x8] sm:$0xff]  ;;  %v381_v8 = vmov 0.0   ;;  %v132_v9 = vld [vmem:[%s466_s4] sm:$0xff]  ;;  %vm138_vm2 = vcmask 130048   ;;  %vm224_vm3 = vcmask 64512   ;;  %s382_s14 = smov [#allocation3]  }
   0x8   :  { %36 = vperm.xlu0 %352, %v32_v3   ;;  %344 = vmatprep.subr.bf16.mxu1 %v379_v7  ;;  %v131_v20 = vld [vmem:[%s465_s3] sm:$0xff]  ;;  %v221_v28 = vshrl.u32 %v220_v27, 7  ;;  %s306_s3 = sshll.u32 %s382_s14, 4  ;;  %vm298_vm4 = vcmask 57344   ;;  %s307_s3 = int_to_ptr.vmem [resolvable:$true] %s306_s3 }
   0x9   :  { %330 = vmatmul.mubr.msk.f32.vlgmr.msra.gmra.mrb[0].mxu0 %vm44_vm0, %v30_v4  ;;  %336 = vmatprep.mubr.msk.f32.mxu1 %vm380_vm1, %v381_v8  ;;  %v214_v10 = vld [vmem:[#allocation2] sm:$0x1]  ;;  %s354_s15 = scalar_lea.vmem %s307_s3, 16  ;;  %s358_s16 = scalar_lea.vmem %s307_s3, 32 }
   0xa   :  { %339 = vmatprep.subr.mxu0 %v381_v8  ;;  %341 = vmatprep.mubr.msk.f32.mxu0 %vm380_vm1, %v381_v8  ;;  %v213_v26 = vld [vmem:[%s467_s5] sm:$0x1]  ;;  %v222_v29 = vsub.s32 0, %v221_v28  ;;  %p355_p0 = scmp.ne.s32.totalorder %s307_s3, %s354_s15  ;;  %p359_p1 = scmp.lt.s32.totalorder %s307_s3, %s307_s3 }
   0xb   :  { %135 = vperm.xlu1 %353, %v132_v9   ;;  %p360_p2 = scmp.lt.s32.totalorder %s358_s16, %s354_s15 }
   0xc   :  { %41 = vperm.xlu0 %352, %v33_v6  }
   0xd   :  { %p361_p3 = por %p360_p2, %p359_p1 }
   0xf   :  { %217 = vperm.xlu1 %353, %v214_v10   ;;  %p362_p4 = pnand %p361_p3, %p355_p0 }
  0x87   :  { %v37_v11 = vpop.permute.xlu0 %36 }
  0x8a   :  { %v136_v21 = vpop.permute.xlu1 %135 }
  0x8b   :  { %v42_v12 = vpop.permute.xlu0 %41 }
  0x8e   :  { %v218_v30 = vpop.permute.xlu1 %217 }
  0x8f   :  { %v223_v31 = vrot.slane %v218_v30, %v222_v29 }
  0xdc   :  { %v331_v13 = vpop.f32.mrb[0].mxu0 }
  0xdd   :  { %v126_v14 = vadd.f32 %v331_v13, %v42_v12  ;;  %v120_v15 = vpop.f32.mrb[1].mxu0 }
  0xde   :  { %v121_v16 = vadd.f32 %v120_v15, %v37_v11 }
  0xdf   :  { %v130_v17 = vmax.f32 %v126_v14, 0.0 }
  0xe0   :  { %v129_v18 = vmax.f32 %v121_v16, 0.0 }
  0xe2   :  { %v345_v19 = vpack.c.bf16 %v130_v17, %v129_v18 }
  0xe4   :  { %346 = vmatpush3.bf16.msra.mxu1 %v345_v19 }
  0xe7   :  { %337 = vmatmul.mubr.msk.f32.vlgmr.msra.gmra.mrb[0].mxu1 %vm138_vm2, %v131_v20 }
 0x1ba   :  { %v208_v22 = vpop.f32.mrb[0].mxu1 }
 0x1bb   :  { %v209_v23 = vadd.f32 %v208_v22, %v136_v21  ;;  %v338_v24 = vpop.f32.mrb[1].mxu1 }
 0x1bd   :  { %v212_v25 = vmax.f32 %v209_v23, 0.0 }
 0x1bf   :  { %340 = vmatpush3.msra.mxu0 %v212_v25 }
 0x1c0   :  { %342 = vmatmul.mubr.msk.f32.vlgmr.msra.gmra.mrb[2].mxu0 %vm224_vm3, %v213_v26 }
 0x293   :  { %v294_v32 = vpop.f32.mrb[2].mxu0 }
 0x294   :  { %v295_v33 = vadd.f32 %v294_v32, %v223_v31  ;;  %v343_v34 = vpop.f32.mrb[3].mxu0 }
 0x296   :  { %299 = vst.msk [vmem:[#allocation3] sm:$0x1] %vm298_vm4, %v295_v33 }
 0x297   :  { %365 = shalt.err (!%p362_p4)
}
 0x298   :  { %s366_s18 = scalar_lea.hbm %s469_s7, 16 }
 0x299   :  { %p367_p5 = scmp.ne.s32.totalorder %s469_s7, %s366_s18  ;;  %p370_p6 = scmp.lt.u32.totalorder %s366_s18, %s469_s7 }
 0x29b   :  { %p372_p7 = pnand %p370_p6, %p367_p5 }
 0x29d   :  { %375 = shalt.err (!%p372_p7)
}
 0x29e   :  { %309 = dma.vmem_to_hbm [thread:$0]  %s307_s3, 16, %s469_s7, [#allocation4]  }
 0x29f   :  { %376 = dma.done.wait [#allocation4], 16  }
 0x2a0   :  { %377 = vsyncadd [#allocation4], 4294967280 }
 0x2a1   :  { %313 = vsyncpa [#allocation4], 1 }

</bundles_post_ra>
